<compile_context>
chip_gen: v5e
topology: v5e:2x2
jax: 0.10.0
libtpu: 0.0.40
codegen_flags: <defaults>
</compile_context>

<pallas_src>
import functools

import jax
import jax.numpy as jnp
from jax.experimental import pallas as pl
from jax.experimental.pallas import tpu as pltpu

IN_SHAPE = (28, 28)
OUT_SHAPE = (2, 5)
TT_RANK = [1, 2, 1]

IN_FEATURES = 1
for d in IN_SHAPE:
    IN_FEATURES *= d          # 784
OUT_FEATURES = 1
for d in OUT_SHAPE:
    OUT_FEATURES *= d         # 10


def _round_up(v, m):
    return ((v + m - 1) // m) * m


# ---------------------------------------------------------------------------
# Pallas kernel: one grid step streams a (bb, 784) f32 slab of x from HBM,
# casts it to bf16 on-chip, multiplies against the resident (784, 128) bf16
# weight on the MXU (f32 accumulation), and writes a (bb, 128) f32 slab.
# ---------------------------------------------------------------------------
def ttlinear_matmul_kernel(x_ref, w_ref, o_ref):
    x_bf16 = x_ref[...].astype(jnp.bfloat16)   # cast hidden under the HBM-bound DMA
    o_ref[...] = jnp.dot(x_bf16, w_ref[...], preferred_element_type=jnp.float32)


def reconstruct_weight(cores, in_shape, out_shape):
    """Plain-JAX glue that mirrors TTLinear.reconstruct_weight exactly."""
    num_dims = len(in_shape)
    # The squeeze(0)/squeeze(-1) below relies on boundary TT-ranks being 1.
    assert cores[0].shape[0] == 1 and cores[-1].shape[-1] == 1, \
        "boundary TT-ranks must be 1"
    weight = cores[0]
    for k in range(1, num_dims):
        weight = jnp.tensordot(weight, cores[k], axes=([-1], [0]))
    weight = jnp.squeeze(weight, axis=0)
    weight = jnp.squeeze(weight, axis=-1)
    # permute (m0, n0, m1, n1, ...) -> (m0, m1, ..., n0, n1, ...)
    dims = [2 * k for k in range(num_dims)] + [2 * k + 1 for k in range(num_dims)]
    weight = jnp.transpose(weight, dims)
    out_features = 1
    for d in out_shape:
        out_features *= d
    return weight.reshape(-1, out_features)


@functools.partial(jax.jit, static_argnames=("block_b",))
def tt_linear_forward(x, cores, block_b=2048):
    """Forward pass of TTLinear: x @ reconstruct_weight(cores)."""
    w = reconstruct_weight(cores, IN_SHAPE, OUT_SHAPE)  # (784, 10) f32
    batch, k = x.shape
    n = w.shape[1]

    # Only the tiny weight is padded (N: 10 -> 128 lanes) and pre-cast to bf16.
    # K = 784 is already a multiple of 8, so it needs no padding.
    n_pad = max(_round_up(n, 128), 128)
    w_p = jnp.zeros((k, n_pad), jnp.bfloat16).at[:, :n].set(w.astype(jnp.bfloat16))

    # Batch tile:
    #  * large by default (amortizes the ~0.35 us per-grid-step overhead),
    #  * capped at ~batch/2 so the "parallel" batch axis can feed both v7x TCs,
    #  * rounded to 16 rows (sublane-aligned, bf16-friendly), never >> batch.
    bb = min(block_b, max((batch + 1) // 2, 16))
    bb = min(_round_up(bb, 16), _round_up(batch, 8))
    bb = max(bb, 8)

    grid = (pl.cdiv(batch, bb),)   # last block may be partial; Pallas clamps it.

    cost = pl.CostEstimate(
        flops=2 * batch * k * n_pad,
        transcendentals=0,
        bytes_accessed=(batch * k * 4          # x stream, f32 (dominant)
                        + k * n_pad * 2        # bf16 weight, resident
                        + batch * n_pad * 4),  # f32 output
    )

    out = pl.pallas_call(
        ttlinear_matmul_kernel,
        out_shape=jax.ShapeDtypeStruct((batch, n_pad), jnp.float32),
        grid_spec=pltpu.PrefetchScalarGridSpec(
            num_scalar_prefetch=0,
            grid=grid,
            in_specs=[
                # x consumed in place: no padded/cast wrapper copy. Last block dim
                # equals the full array dim (784), which is legal.
                pl.BlockSpec((bb, k), lambda i: (i, 0)),
                # Weight maps to the same block every step -> stays resident in VMEM.
                # (pl.Buffered(1) would reclaim the redundant second buffer (~200 KB);
                #  left at the default for maximally portable lowering.)
                pl.BlockSpec((k, n_pad), lambda i: (0, 0)),
            ],
            out_specs=pl.BlockSpec((bb, n_pad), lambda i: (i, 0)),
        ),
        compiler_params=pltpu.CompilerParams(
            dimension_semantics=("parallel",),
            # Large batch tiles need ~18 MiB double-buffered; raise the scoped VMEM
            # limit above v5e's 16 MiB default (still below v7x's 64 MiB physical).
            vmem_limit_bytes=48 * 1024 * 1024,
        ),
        cost_estimate=cost,
    )(x, w_p)

    # Strip the output-lane padding (batch was never padded).
    return out[:, :n]


if __name__ == "__main__":
    key = jax.random.PRNGKey(0)
    k_x, k_c0, k_c1, k_x2 = jax.random.split(key, 4)

    # Deterministic parameter init matching torch.randn(core_shape) shapes:
    #   core0: (1, 28, 2, 2), core1: (2, 28, 5, 1)
    cores = [
        jax.random.normal(
            k_c0, (TT_RANK[0], IN_SHAPE[0], OUT_SHAPE[0], TT_RANK[1]), jnp.float32
        ),
        jax.random.normal(
            k_c1, (TT_RANK[1], IN_SHAPE[1], OUT_SHAPE[1], TT_RANK[2]), jnp.float32
        ),
    ]

    w_ref = reconstruct_weight(cores, IN_SHAPE, OUT_SHAPE)  # (784, 10) f32 reference

    def check(x, out):
        # Tight check against a matched-precision (bf16 in, f32 accum) reference.
        ref_bf16 = jnp.dot(
            x.astype(jnp.bfloat16), w_ref.astype(jnp.bfloat16),
            preferred_element_type=jnp.float32)
        assert jnp.allclose(out, ref_bf16, rtol=1e-3, atol=1e-2), \
            "mismatch vs. bf16 reference"
        # Loose check against the exact f32 PyTorch semantics (bf16 rounding only).
        ref_f32 = x @ w_ref
        assert jnp.allclose(out, ref_f32, rtol=5e-2, atol=1.0), \
            "mismatch vs. f32 reference"

    # Small batch (single grid step; block clamps to the 8-row batch).
    batch = 8
    x = jax.random.normal(k_x, (batch, IN_FEATURES), jnp.float32)  # (8, 784)
    out = jax.block_until_ready(tt_linear_forward(x, cores))
    assert out.shape == (batch, OUT_FEATURES)
    check(x, out)

    # Ragged batch, multi-step grid with a partial trailing block (300 = 2*128 + 44).
    batch2 = 300
    x2 = jax.random.normal(k_x2, (batch2, IN_FEATURES), jnp.float32)
    out2 = jax.block_until_ready(tt_linear_forward(x2, cores, block_b=128))
    assert out2.shape == (batch2, OUT_FEATURES)
    check(x2, out2)

    # Default (large) tile, auto-capped to ~batch/2 so both v7x cores get one block.
    out3 = jax.block_until_ready(tt_linear_forward(x2, cores))
    assert out3.shape == (batch2, OUT_FEATURES)
    check(x2, out3)

    print("KERNEL_OK")
</pallas_src>

<mosaic_0001>
module attributes {stable_mosaic.version = 11 : i64} {
  func.func @ttlinear_matmul_kernel(%arg0: i32, %arg1: memref<8x784xf32, #tpu.memory_space<vmem>>, %arg2: memref<784x128xbf16, #tpu.memory_space<vmem>>, %arg3: memref<8x128xf32, #tpu.memory_space<vmem>>) attributes {dimension_semantics = [#tpu.dimension_semantics<parallel>], iteration_bounds = array<i64: 1>, scalar_prefetch = 0 : i64, scratch_operands = 0 : i64, tpu.core_type = #tpu.core_type<tc>, window_params = [{transform_indices = @transform_0, window_bounds = array<i64: 8, 784>}, {pipeline_mode = #tpu.pipeline_mode<synchronous>, transform_indices = @transform_1, window_bounds = array<i64: 784, 128>}, {transform_indices = @transform_2, window_bounds = array<i64: 8, 128>}]} {
    %c0 = arith.constant 0 : index
    %c0_0 = arith.constant 0 : index
    %0 = vector.load %arg1[%c0, %c0_0] : memref<8x784xf32, #tpu.memory_space<vmem>>, vector<8x784xf32>
    %1 = arith.truncf %0 : vector<8x784xf32> to vector<8x784xbf16>
    %c0_1 = arith.constant 0 : index
    %c0_2 = arith.constant 0 : index
    %2 = vector.load %arg2[%c0_1, %c0_2] : memref<784x128xbf16, #tpu.memory_space<vmem>>, vector<784x128xbf16>
    %cst = arith.constant dense<0.000000e+00> : vector<8x128xf32>
    %3 = tpu.matmul %1, %2, %cst {dimension_numbers = #tpu.dot_dimension_numbers<[1], [0], [0], [1], [0, 0, 1, 1], [], []>} : vector<8x784xbf16>, vector<784x128xbf16>, vector<8x128xf32> -> vector<8x128xf32>
    %c0_3 = arith.constant 0 : index
    %c0_4 = arith.constant 0 : index
    %4 = vector.load %arg3[%c0_3, %c0_4] : memref<8x128xf32, #tpu.memory_space<vmem>>, vector<8x128xf32>
    tpu.vector_store %arg3[%c0_3, %c0_4], %3 {strides = array<i32>} : memref<8x128xf32, #tpu.memory_space<vmem>>, vector<8x128xf32>,
    return
  }
  func.func @transform_0(%arg0: i32) -> (i32, i32) {
    %c0_i32 = arith.constant 0 : i32
    %c0_i32_0 = arith.constant 0 : i32
    return %arg0, %c0_i32 : i32, i32
  }
  func.func @transform_1(%arg0: i32) -> (i32, i32) {
    %c0_i32 = arith.constant 0 : i32
    %c0_i32_0 = arith.constant 0 : i32
    %c0_i32_1 = arith.constant 0 : i32
    return %c0_i32, %c0_i32_0 : i32, i32
  }
  func.func @transform_2(%arg0: i32) -> (i32, i32) {
    %c0_i32 = arith.constant 0 : i32
    %c0_i32_0 = arith.constant 0 : i32
    return %arg0, %c0_i32 : i32, i32
  }
}

</mosaic_0001>

<bundles_post_ra>
// kernel: tt_linear_forward.1
= control target key start
LH: loop header
LB: loop body
LE: loop exit
PB: predicated region body
PF: predicated region fallthrough
CT: control target
= control target key end

     0   :  { %s991_s0 = inlined_call_operand.vmem [shape: f32[8,784], index: 0, kind: input, shape index: {}]   ;;  %s992_s1 = inlined_call_operand.vmem [shape: bf16[784,128], index: 1, kind: input, shape index: {}]   ;;  %s993_s2 = inlined_call_operand.hbm [shape: f32[8,128], index: 2, kind: output, shape index: {}]  }
   0x1   :  { %v735_v0 = vld [vmem:[%s992_s1 + $0x38] sm:$0xff]  ;;  %v734_v3 = vld [vmem:[%s992_s1 + $0x30] sm:$0xff]  ;;  %v733_v8 = vld [vmem:[%s992_s1 + $0x28] sm:$0xff] }
   0x2   :  { %v743_v1 = vld [vmem:[%s992_s1 + $0x78] sm:$0xff]  ;;  %423 = vmatpush.bf16.msra.mxu0 %v735_v0  ;;  %v742_v4 = vld [vmem:[%s992_s1 + $0x70] sm:$0xff]  ;;  %v741_v9 = vld [vmem:[%s992_s1 + $0x68] sm:$0xff] }
   0x3   :  { %v751_v2 = vld [vmem:[%s992_s1 + $0xb8] sm:$0xff]  ;;  %436 = vmatpush.bf16.msra.mxu1 %v743_v1  ;;  %v750_v5 = vld [vmem:[%s992_s1 + $0xb0] sm:$0xff]  ;;  %v749_v10 = vld [vmem:[%s992_s1 + $0xa8] sm:$0xff] }
   0x4   :  { %449 = vmatpush.bf16.msra.mxu2 %v751_v2  ;;  %v759_v6 = vld [vmem:[%s992_s1 + $0xf8] sm:$0xff]  ;;  %v758_v7 = vld [vmem:[%s992_s1 + $0xf0] sm:$0xff]  ;;  %v757_v11 = vld [vmem:[%s992_s1 + $0xe8] sm:$0xff] }
   0x5   :  { %462 = vmatpush.bf16.msra.mxu3 %v759_v6  ;;  %v732_v12 = vld [vmem:[%s992_s1 + $0x20] sm:$0xff]  ;;  %v731_v16 = vld [vmem:[%s992_s1 + $0x18] sm:$0xff] }
   0x6   :  { %424 = vmatpush.bf16.msra.mxu0 %v734_v3  ;;  %v740_v13 = vld [vmem:[%s992_s1 + $0x60] sm:$0xff]  ;;  %v739_v17 = vld [vmem:[%s992_s1 + $0x58] sm:$0xff] }
   0x7   :  { %437 = vmatpush.bf16.msra.mxu1 %v742_v4  ;;  %v748_v14 = vld [vmem:[%s992_s1 + $0xa0] sm:$0xff]  ;;  %v747_v18 = vld [vmem:[%s992_s1 + $0x98] sm:$0xff] }
   0x8   :  { %450 = vmatpush.bf16.msra.mxu2 %v750_v5  ;;  %v756_v15 = vld [vmem:[%s992_s1 + $0xe0] sm:$0xff] }
   0x9   :  { %463 = vmatpush.bf16.msra.mxu3 %v758_v7 }
   0xa   :  { %425 = vmatpush.bf16.msra.mxu0 %v733_v8 }
   0xb   :  { %438 = vmatpush.bf16.msra.mxu1 %v741_v9 }
   0xc   :  { %451 = vmatpush.bf16.msra.mxu2 %v749_v10 }
   0xd   :  { %464 = vmatpush.bf16.msra.mxu3 %v757_v11 }
   0xe   :  { %426 = vmatpush.bf16.msra.mxu0 %v732_v12 }
   0xf   :  { %439 = vmatpush.bf16.msra.mxu1 %v740_v13 }
  0x10   :  { %452 = vmatpush.bf16.msra.mxu2 %v748_v14 }
  0x11   :  { %7 = vsyncpa [#allocation3], 0  ;;  %465 = vmatpush.bf16.msra.mxu3 %v756_v15  ;;  %v755_v19 = vld [vmem:[%s992_s1 + $0xd8] sm:$0xff]  ;;  %v730_v20 = vld [vmem:[%s992_s1 + $0x10] sm:$0xff]  ;;  %vm419_vm0 = vcmask 130048   ;;  %s522_s11 = sshll.u32 %s993_s2, 4  ;;  %s523_s11 = int_to_ptr.hbm [resolvable:$true] %s522_s11 }
  0x12   :  { %427 = vmatpush.bf16.msra.mxu0 %v731_v16  ;;  %v738_v21 = vld [vmem:[%s992_s1 + $0x50] sm:$0xff]  ;;  %v729_v24 = vld [vmem:[%s992_s1 + $0x8] sm:$0xff]  ;;  %v728_v27 = vld [vmem:[%s992_s1] sm:$0xff] }
  0x13   :  { %440 = vmatpush.bf16.msra.mxu1 %v739_v17  ;;  %v746_v22 = vld [vmem:[%s992_s1 + $0x90] sm:$0xff]  ;;  %v737_v25 = vld [vmem:[%s992_s1 + $0x48] sm:$0xff]  ;;  %v736_v29 = vld [vmem:[%s992_s1 + $0x40] sm:$0xff] }
  0x14   :  { %453 = vmatpush.bf16.msra.mxu2 %v747_v18  ;;  %v754_v23 = vld [vmem:[%s992_s1 + $0xd0] sm:$0xff]  ;;  %v745_v26 = vld [vmem:[%s992_s1 + $0x88] sm:$0xff]  ;;  %v13_v30 = vld [vmem:[%s991_s0] sm:$0xff] }
  0x15   :  { %466 = vmatpush.bf16.msra.mxu3 %v755_v19  ;;  %v753_v28 = vld [vmem:[%s992_s1 + $0xc8] sm:$0xff]  ;;  %v744_v32 = vld [vmem:[%s992_s1 + $0x80] sm:$0xff]  ;;  %v767_v33 = vld [vmem:[%s992_s1 + $0x138] sm:$0xff]  ;;  %v20_v37 = vpack.c.bf16 %v13_v30, %v13_v30 }
  0x16   :  { %428 = vmatpush.bf16.msra.mxu0 %v730_v20  ;;  %v14_v31 = vld [vmem:[%s991_s0 + $0x8] sm:$0xff]  ;;  %v15_v34 = vld [vmem:[%s991_s0 + $0x10] sm:$0xff]  ;;  %v775_v35 = vld [vmem:[%s992_s1 + $0x178] sm:$0xff] }
  0x17   :  { %441 = vmatpush.bf16.msra.mxu1 %v738_v21  ;;  %v776_v36 = vld [vmem:[%s992_s1 + $0x180] sm:$0xff]  ;;  %v21_v38 = vpack.c.bf16 %v14_v31, %v14_v31  ;;  %v22_v39 = vpack.c.bf16 %v15_v34, %v15_v34  ;;  %v16_v41 = vld [vmem:[%s991_s0 + $0x18] sm:$0xff]  ;;  %v766_v42 = vld [vmem:[%s992_s1 + $0x130] sm:$0xff] }
  0x18   :  { %454 = vmatpush.bf16.msra.mxu2 %v746_v22  ;;  %v752_v40 = vld [vmem:[%s992_s1 + $0xc0] sm:$0xff]  ;;  %v774_v43 = vld [vmem:[%s992_s1 + $0x170] sm:$0xff]  ;;  %v23_v44 = vpack.c.bf16 %v16_v41, %v16_v41  ;;  %v765_v45 = vld [vmem:[%s992_s1 + $0x128] sm:$0xff] }
  0x19   :  { %467 = vmatpush.bf16.msra.mxu3 %v754_v23  ;;  %v773_v46 = vld [vmem:[%s992_s1 + $0x168] sm:$0xff]  ;;  %v764_v47 = vld [vmem:[%s992_s1 + $0x120] sm:$0xff]  ;;  %v763_v49 = vld [vmem:[%s992_s1 + $0x118] sm:$0xff] }
  0x1a   :  { %429 = vmatpush.bf16.msra.mxu0 %v729_v24  ;;  %v772_v48 = vld [vmem:[%s992_s1 + $0x160] sm:$0xff]  ;;  %v19_v50 = vld [vmem:[%s991_s0 + $0x30] sm:$0xff]  ;;  %v771_v51 = vld [vmem:[%s992_s1 + $0x158] sm:$0xff] }
  0x1b   :  { %442 = vmatpush.bf16.msra.mxu1 %v737_v25  ;;  %v26_v52 = vpack.c.bf16 %v19_v50, %v19_v50  ;;  %v762_v53 = vld [vmem:[%s992_s1 + $0x110] sm:$0xff]  ;;  %v761_v55 = vld [vmem:[%s992_s1 + $0x108] sm:$0xff]  ;;  %v760_v57 = vld [vmem:[%s992_s1 + $0x100] sm:$0xff] }
  0x1c   :  { %455 = vmatpush.bf16.msra.mxu2 %v745_v26  ;;  %v770_v54 = vld [vmem:[%s992_s1 + $0x150] sm:$0xff]  ;;  %v769_v56 = vld [vmem:[%s992_s1 + $0x148] sm:$0xff]  ;;  %v17_v58 = vld [vmem:[%s991_s0 + $0x20] sm:$0xff] }
  0x1d   :  { %468 = vmatpush.bf16.msra.mxu3 %v753_v28  ;;  %v768_v59 = vld [vmem:[%s992_s1 + $0x140] sm:$0xff]  ;;  %v18_v60 = vld [vmem:[%s991_s0 + $0x28] sm:$0xff]  ;;  %v24_v61 = vpack.c.bf16 %v17_v58, %v17_v58  ;;  %s804_s0 = smov [#allocation2]  }
  0x1e   :  { %430 = vmatpush.bf16.msra.mxu0 %v728_v27  ;;  %v25_v62 = vpack.c.bf16 %v18_v60, %v18_v60  ;;  %s520_s1 = sshll.u32 %s804_s0, 4  ;;  %s521_s1 = int_to_ptr.vmem [resolvable:$true] %s520_s1 }
  0x1f   :  { %443 = vmatpush.bf16.msra.mxu1 %v736_v29 }
  0x20   :  { %456 = vmatpush.bf16.msra.mxu2 %v744_v32 }
  0x21   :  { %431 = vmatmul.bf16.vlgmr.msra.gmra.mxu0 %v20_v37  ;;  %469 = vmatpush.bf16.msra.mxu3 %v752_v40 }
  0x22   :  { %475 = vmatpush.bf16.msrb.mxu0 %v767_v33  ;;  %444 = vmatmul.bf16.vlgmr.msra.gmra.mxu1 %v21_v38 }
  0x23   :  { %488 = vmatpush.bf16.msrb.mxu1 %v775_v35  ;;  %457 = vmatmul.bf16.vlgmr.msra.gmra.mxu2 %v22_v39 }
  0x24   :  { %508 = vmatpush.bf16.msrb.mxu2 %v776_v36  ;;  %470 = vmatmul.bf16.vlgmr.msra.gmra.mxu3 %v23_v44 }
  0x26   :  { %476 = vmatpush.bf16.msrb.mxu0 %v766_v42 }
  0x27   :  { %489 = vmatpush.bf16.msrb.mxu1 %v774_v43 }
  0x2a   :  { %477 = vmatpush.bf16.msrb.mxu0 %v765_v45 }
  0x2b   :  { %490 = vmatpush.bf16.msrb.mxu1 %v773_v46 }
  0x2e   :  { %478 = vmatpush.bf16.msrb.mxu0 %v764_v47 }
  0x2f   :  { %491 = vmatpush.bf16.msrb.mxu1 %v772_v48 }
  0x32   :  { %479 = vmatpush.bf16.msrb.mxu0 %v763_v49 }
  0x33   :  { %492 = vmatpush.bf16.msrb.mxu1 %v771_v51  ;;  %727 = vmatmul.msk.bf16.vlgmr.msrb.gmra.mxu2 %vm419_vm0, %v26_v52 }
  0x36   :  { %480 = vmatpush.bf16.msrb.mxu0 %v762_v53 }
  0x37   :  { %493 = vmatpush.bf16.msrb.mxu1 %v770_v54 }
  0x3a   :  { %481 = vmatpush.bf16.msrb.mxu0 %v761_v55 }
  0x3b   :  { %494 = vmatpush.bf16.msrb.mxu1 %v769_v56 }
  0x3e   :  { %482 = vmatpush.bf16.msrb.mxu0 %v760_v57 }
  0x3f   :  { %495 = vmatpush.bf16.msrb.mxu1 %v768_v59 }
  0x41   :  { %483 = vmatmul.bf16.vlgmr.msrb.gmra.mxu0 %v24_v61 }
  0x42   :  { %496 = vmatmul.bf16.vlgmr.msrb.gmra.mxu1 %v25_v62 }
  0x9e   :  { %v432_v63 = vpop.f32.mrf.mxu0 }
  0x9f   :  { %v445_v0 = vpop.f32.mrf.mxu1 }
  0xa0   :  { %v446_v7 = vadd.f32 %v445_v0, %v432_v63 }
  0xa6   :  { %v458_v1 = vpop.f32.mrf.mxu2  ;;  %v434_v2 = vpop.f32.mrf.mxu0 }
  0xa7   :  { %v447_v3 = vpop.f32.mrf.mxu1  ;;  %v471_v4 = vpop.f32.mrf.mxu3  ;;  %v459_v9 = vadd.f32 %v458_v1, %v446_v7 }
  0xa9   :  { %v472_v10 = vadd.f32 %v471_v4, %v459_v9 }
  0xae   :  { %v460_v5 = vpop.f32.mrf.mxu2 }
  0xaf   :  { %v473_v6 = vpop.f32.mrf.mxu3 }
  0xb6   :  { %v510_v8 = vpop.f32.mrf.mxu2 }
  0xbe   :  { %v484_v11 = vpop.f32.mrf.mxu0  ;;  %v512_v14 = vpop.f32.mrf.mxu2 }
  0xbf   :  { %v485_v12 = vadd.f32 %v484_v11, %v472_v10  ;;  %v497_v13 = vpop.f32.mrf.mxu1 }
  0xc1   :  { %v498_v15 = vadd.f32 %v497_v13, %v485_v12 }
  0xc3   :  { %v511_v16 = vadd.f32 %v510_v8, %v498_v15 }
  0xc5   :  { %514 = vst [vmem:[#allocation2] sm:$0xff] %v511_v16 }
  0xc6   :  { %v486_v17 = vpop.f32.mrf.mxu0  ;;  %525 = dma.vmem_to_hbm [thread:$0]  %s521_s1, 128, %s523_s11, [#allocation3]  }
  0xc7   :  { %v499_v18 = vpop.f32.mrf.mxu1 }
  0xc8   :  { %802 = dma.done.wait [#allocation3], 128  }
  0xc9   :  { %803 = vsyncadd [#allocation3], 4294967168 }
  0xca   :  { %530 = vsyncpa [#allocation3], 1 }

</bundles_post_ra>
